<compile_context>
chip_gen: v7x
topology: tpu7x:2x2x1
jax: 0.10.0
libtpu: 0.0.40
codegen_flags: <defaults>
</compile_context>

<pallas_src>
import functools

import jax
import jax.numpy as jnp
from jax.experimental import pallas as pl
from jax.experimental.pallas import tpu as pltpu

LANE = 128
TARGET_BLOCK_BYTES = 4 * 1024 * 1024   # ~4 MiB payload per grid step (dtype-aware rows)
MIN_GRID_STEPS = 4                     # aim for >= 4 balanced steps on mid-size inputs
VMEM_LIMIT_BYTES = 32 * 1024 * 1024    # 16 MiB double-buffered footprint + headroom


def _ceil_div(a: int, b: int) -> int:
    return -(-a // b)


def _round_up(a: int, m: int) -> int:
    return _ceil_div(a, m) * m


def _poly_kernel(coef_ref, x_ref, o_ref, *, degree: int):
    # coef_ref: SMEM (degree+1,) f32 ; x_ref / o_ref: VMEM (block_rows, LANE) tiles.
    # Upcast per-tile to f32 (v5e's VPU has no bf16 arithmetic), clamp, then Horner.
    x = jnp.clip(x_ref[...].astype(jnp.float32), -10.0, 10.0)
    result = jnp.full(x.shape, coef_ref[degree], dtype=jnp.float32)
    for i in range(degree - 1, -1, -1):  # ((c_d*x + c_{d-1})*x + ...)*x + c_0
        result = result * x + coef_ref[i]
    o_ref[...] = result.astype(o_ref.dtype)


def _poly_jnp(x, coef_f32):
    """Plain-JAX Horner evaluation (ragged-tail path)."""
    degree = coef_f32.shape[0] - 1
    xc = jnp.clip(x.astype(jnp.float32), -10.0, 10.0)
    result = jnp.full(xc.shape, coef_f32[degree], dtype=jnp.float32)
    for i in range(degree - 1, -1, -1):
        result = result * xc + coef_f32[i]
    return result


def _poly_powers_ref(x, coef_f32):
    """Reference matching the torch forward literally (sum of coefficients[i] * x**i)."""
    xc = jnp.clip(x.astype(jnp.float32), -10.0, 10.0)
    result = jnp.zeros_like(xc)
    for i in range(coef_f32.shape[0]):
        result = result + coef_f32[i] * xc ** i
    return result


def _pick_block_rows(rows: int, itemsize: int) -> int:
    """Dtype- and size-aware block height (sublane-aligned, ~TARGET_BLOCK_BYTES)."""
    sublane = max(8, 32 // itemsize)  # 8 for f32, 16 for bf16, 32 for 1-byte dtypes
    cap = max(sublane,
              (TARGET_BLOCK_BYTES // (itemsize * LANE)) // sublane * sublane)
    if rows >= cap * MIN_GRID_STEPS:
        return cap                                   # large input: full-size streaming blocks
    if rows <= sublane * MIN_GRID_STEPS:
        return rows                                  # tiny input: one full-array block
    # Mid-size: >= MIN_GRID_STEPS roughly equal, sublane-aligned blocks so both v7x
    # TensorCores get work and DMA/compute pipelining has >1 step.
    return min(cap, _round_up(_ceil_div(rows, MIN_GRID_STEPS), sublane))


def polynomial_activation(x: jax.Array, coefficients: jax.Array) -> jax.Array:
    """Elementwise clamp(-10, 10) followed by sum_i c_i * x**i (torch semantics)."""
    orig_shape = x.shape
    orig_dtype = x.dtype
    degree = coefficients.shape[0] - 1
    coef_f32 = coefficients.astype(jnp.float32)

    xf = x.reshape(-1)            # contiguous reshape: metadata only, no HBM copy
    n = xf.shape[0]
    if n == 0:
        return x
    rem = n % LANE
    n_main = n - rem
    itemsize = jnp.dtype(orig_dtype).itemsize

    pieces = []
    if n_main > 0:
        x_main = xf if rem == 0 else xf[:n_main]
        x2d = x_main.reshape(-1, LANE)
        rows = x2d.shape[0]
        block_rows = _pick_block_rows(rows, itemsize)
        grid = _ceil_div(rows, block_rows)            # ragged last block handled by Pallas
        out2d = pl.pallas_call(
            functools.partial(_poly_kernel, degree=degree),
            out_shape=jax.ShapeDtypeStruct(x2d.shape, orig_dtype),
            grid=(grid,),
            in_specs=[
                pl.BlockSpec(memory_space=pltpu.SMEM),               # coefficients
                pl.BlockSpec((block_rows, LANE), lambda i: (i, 0)),  # x tile
            ],
            out_specs=pl.BlockSpec((block_rows, LANE), lambda i: (i, 0)),
            compiler_params=pltpu.CompilerParams(
                # "parallel" lets v7x shard the row loop across its 2 TensorCores;
                # no-op on v5e/v6e (single TC).
                dimension_semantics=("parallel",),
                # Explicit budget: 2 buffers x (in + out) x <=4 MiB = <=16 MiB, plus
                # headroom.  Above v5e's 16 MiB scoped default, within v7x's 64 MiB
                # physical VMEM.
                vmem_limit_bytes=VMEM_LIMIT_BYTES,
            ),
        )(coef_f32, x2d)
        pieces.append(out2d.reshape(-1))

    if rem > 0:
        # Rare ragged tail (< 128 elements, only when the element count is not a
        # multiple of 128).  Any scheme that stitches two device buffers into one
        # n-element output costs one extra read+write pass under XLA's buffer
        # semantics, so keep the simple path; typical NN tensors never hit it.
        pieces.append(_poly_jnp(xf[n_main:], coef_f32).astype(orig_dtype))

    out = pieces[0] if len(pieces) == 1 else jnp.concatenate(pieces)
    return out.reshape(orig_shape)


if __name__ == "__main__":
    degree = 2
    # nn.Parameter(torch.ones(degree + 1) * 0.01) — deterministic init.
    coefficients = jnp.ones((degree + 1,), dtype=jnp.float32) * 0.01

    key = jax.random.PRNGKey(0)
    x = jax.random.normal(key, (2, 4, 16, 16), dtype=jnp.float32) * 5.0

    out = jax.block_until_ready(polynomial_activation(x, coefficients))

    ref = _poly_powers_ref(x, coefficients).astype(x.dtype)   # literal torch-forward reference
    assert out.shape == x.shape and out.dtype == x.dtype
    assert jnp.allclose(out, ref, atol=1e-5, rtol=1e-5)

    # Exercise a larger, bf16 input (dtype-aware block sizing + multi-step grid path).
    xb = (jax.random.normal(jax.random.PRNGKey(1), (8, 64, 512), dtype=jnp.float32) * 5.0
          ).astype(jnp.bfloat16)
    outb = jax.block_until_ready(polynomial_activation(xb, coefficients))
    refb = _poly_powers_ref(xb, coefficients).astype(jnp.bfloat16)
    assert outb.shape == xb.shape and outb.dtype == xb.dtype
    assert jnp.allclose(outb.astype(jnp.float32), refb.astype(jnp.float32),
                        atol=2e-2, rtol=2e-2)

    print("KERNEL_OK")
</pallas_src>

<mosaic_0001>
module attributes {stable_mosaic.version = 11 : i64} {
  func.func @_poly_kernel(%arg0: i32, %arg1: memref<3xf32, #tpu.memory_space<smem>>, %arg2: memref<16x128xf32, #tpu.memory_space<vmem>>, %arg3: memref<16x128xf32, #tpu.memory_space<vmem>>) attributes {dimension_semantics = [#tpu.dimension_semantics<parallel>], iteration_bounds = array<i64: 1>, scalar_prefetch = 0 : i64, scratch_operands = 0 : i64, tpu.core_type = #tpu.core_type<tc>, window_params = [{transform_indices = @transform_0, window_bounds = array<i64: 3>}, {transform_indices = @transform_1, window_bounds = array<i64: 16, 128>}, {transform_indices = @transform_2, window_bounds = array<i64: 16, 128>}]} {
    %c0 = arith.constant 0 : index
    %c0_0 = arith.constant 0 : index
    %0 = vector.load %arg2[%c0, %c0_0] : memref<16x128xf32, #tpu.memory_space<vmem>>, vector<16x128xf32>
    %cst = arith.constant -1.000000e+01 : f32
    %cst_1 = arith.constant 1.000000e+01 : f32
    %1 = vector.broadcast %cst : f32 to vector<16x128xf32>
    %2 = arith.maximumf %1, %0 : vector<16x128xf32>
    %3 = vector.broadcast %cst_1 : f32 to vector<16x128xf32>
    %4 = arith.minimumf %3, %2 : vector<16x128xf32>
    %c2 = arith.constant 2 : index
    %5 = memref.load %arg1[%c2] : memref<3xf32, #tpu.memory_space<smem>>
    %6 = vector.broadcast %5 : f32 to vector<16x128xf32>
    %7 = arith.mulf %6, %4 : vector<16x128xf32>
    %c1 = arith.constant 1 : index
    %8 = memref.load %arg1[%c1] : memref<3xf32, #tpu.memory_space<smem>>
    %9 = vector.broadcast %8 : f32 to vector<16x128xf32>
    %10 = arith.addf %7, %9 : vector<16x128xf32>
    %11 = arith.mulf %10, %4 : vector<16x128xf32>
    %c0_2 = arith.constant 0 : index
    %12 = memref.load %arg1[%c0_2] : memref<3xf32, #tpu.memory_space<smem>>
    %13 = vector.broadcast %12 : f32 to vector<16x128xf32>
    %14 = arith.addf %11, %13 : vector<16x128xf32>
    %c0_3 = arith.constant 0 : index
    %c0_4 = arith.constant 0 : index
    %15 = vector.load %arg3[%c0_3, %c0_4] : memref<16x128xf32, #tpu.memory_space<vmem>>, vector<16x128xf32>
    tpu.vector_store %arg3[%c0_3, %c0_4], %14 {strides = array<i32>} : memref<16x128xf32, #tpu.memory_space<vmem>>, vector<16x128xf32>,
    return
  }
  func.func @transform_0(%arg0: i32) -> i32 {
    %c0_i32 = arith.constant 0 : i32
    %c0_i32_0 = arith.constant 0 : i32
    return %c0_i32 : i32
  }
  func.func @transform_1(%arg0: i32) -> (i32, i32) {
    %c0_i32 = arith.constant 0 : i32
    %c0_i32_0 = arith.constant 0 : i32
    return %arg0, %c0_i32 : i32, i32
  }
  func.func @transform_2(%arg0: i32) -> (i32, i32) {
    %c0_i32 = arith.constant 0 : i32
    %c0_i32_0 = arith.constant 0 : i32
    return %arg0, %c0_i32 : i32, i32
  }
}

</mosaic_0001>

<bundles_post_ra>
// kernel: tpu_custom_call.1
= control target key start
LH: loop header
LB: loop body
LE: loop exit
PB: predicated region body
PF: predicated region fallthrough
CT: control target
= control target key end

     0   :  { %7 = vsyncpa [#allocation5], 0  ;;  %s208_s0 = inlined_call_operand.hbm [shape: f32[3], index: 0, kind: input, shape index: {}]   ;;  %s209_s1 = inlined_call_operand.hbm [shape: f32[16,128], index: 1, kind: input, shape index: {}]   ;;  %s210_s2 = inlined_call_operand.hbm [shape: f32[16,128], index: 2, kind: output, shape index: {}]  }
   0x1   :  { %8 = vsyncpa [#allocation3], 0 }
   0x2   :  { %9 = vsyncpa [#allocation4], 0  ;;  %s86_s11 = scalar_lea.hbm %s208_s0, 16 }
   0x3   :  { %p87_p0 = scmp.ne.s32.totalorder %s208_s0, %s86_s11  ;;  %p90_p1 = scmp.lt.u32.totalorder %s86_s11, %s208_s0 }
   0x5   :  { %p92_p2 = pnand %p90_p1, %p87_p0 }
   0x7   :  { %95 = shalt.err (!%p92_p2)
}
   0x8   :  { %s146_s16 = smov [#allocation2]   ;;  %s147_s19 = smov [#allocation6]  }
   0x9   :  { %17 = dma.hbm_to_smem %s208_s0, 16, %s146_s16, [#allocation5]  }
   0xa   :  { %s23_s20 = sshll.u32 %s147_s19, 4  ;;  %s96_s23 = scalar_lea.hbm %s209_s1, 256  ;;  %s24_s20 = int_to_ptr.vmem [resolvable:$true] %s23_s20 }
   0xb   :  { %p97_p3 = scmp.ne.s32.totalorder %s209_s1, %s96_s23  ;;  %p100_p4 = scmp.lt.u32.totalorder %s96_s23, %s209_s1 }
   0xd   :  { %p102_p5 = pnand %p100_p4, %p97_p3 }
   0xf   :  { %105 = shalt.err (!%p102_p5)
}
  0x10   :  { %s106_s28 = scalar_lea.vmem %s24_s20, 256  ;;  %p111_p7 = scmp.lt.s32.totalorder %s24_s20, %s24_s20 }
  0x11   :  { %p107_p6 = scmp.ne.s32.totalorder %s24_s20, %s106_s28  ;;  %p112_p8 = scmp.lt.s32.totalorder %s106_s28, %s106_s28 }
  0x13   :  { %p113_p9 = por %p112_p8, %p111_p7 }
  0x15   :  { %p114_p10 = pnand %p113_p9, %p107_p6 }
  0x17   :  { %117 = shalt.err (!%p114_p10)
}
  0x18   :  { %s148_s0 = smov 128   ;;  %s149_s29 = smov 8  }
  0x19   :  { %29 = dma.hbm_to_vmem [thread:$0]  %s209_s1, 256, %s24_s20, [#allocation3], %s148_s0, %s148_s0, %s149_s29  }
  0x1a   :  { %140 = dma.done.wait [#allocation5], 16  }
  0x1b   :  { %141 = vsyncadd [#allocation5], 4294967280 }
  0x1c   :  { %142 = dma.done.wait [#allocation3], 256  }
  0x1d   :  { %143 = vsyncadd [#allocation3], 4294967040 }
  0x1e   :  { %36 = sfence }
  0x1f   :  { %v37_v0 = vld [vmem:[#allocation6] sm:$0xff]  ;;  %s79_s4 = sld [smem:[#allocation2 + $0x2]]  ;;  %s80_s5 = sld [smem:[#allocation2 + $0x1]]  ;;  %v38_v1 = vld [vmem:[#allocation6 + $0x8] sm:$0xff] }
  0x20   :  { %s53_s6 = sld [smem:[#allocation2]]  ;;  %v77_v2 = vclamps-f32 %v37_v0, 10.0  ;;  %v78_v3 = vclamps-f32 %v38_v1, 10.0  ;;  %s150_s1 = smov [#allocation7]  }
  0x21   :  { %s64_s7 = sshll.u32 %s150_s1, 4  ;;  %s65_s7 = int_to_ptr.vmem [resolvable:$true] %s64_s7 }
  0x22   :  { %s118_s8 = scalar_lea.vmem %s65_s7, 256  ;;  %p123_p12 = scmp.lt.s32.totalorder %s65_s7, %s65_s7 }
  0x23   :  { %p119_p11 = scmp.ne.s32.totalorder %s65_s7, %s118_s8  ;;  %p124_p13 = scmp.lt.s32.totalorder %s118_s8, %s118_s8 }
  0x25   :  { %v44_v4 = vstv %s79_s4  ;;  %v48_v5 = vstv %s80_s5  ;;  %p125_p0 = por %p124_p13, %p123_p12 }
  0x26   :  { %v45_v6 = vmul.f32 %v77_v2, %v44_v4  ;;  %v46_v7 = vmul.f32 %v78_v3, %v44_v4  ;;  %v54_v10 = vstv %s53_s6 }
  0x27   :  { %p126_p1 = pnand %p125_p0, %p119_p11 }
  0x28   :  { %v49_v8 = vadd.f32 %v48_v5, %v45_v6  ;;  %v50_v9 = vadd.f32 %v48_v5, %v46_v7 }
  0x2a   :  { %v51_v11 = vmul.f32 %v77_v2, %v49_v8  ;;  %v52_v12 = vmul.f32 %v78_v3, %v50_v9 }
  0x2c   :  { %v55_v13 = vadd.f32 %v54_v10, %v51_v11  ;;  %v56_v14 = vadd.f32 %v54_v10, %v52_v12 }
  0x2e   :  { %57 = vst [vmem:[#allocation7] sm:$0xff] %v55_v13  ;;  %58 = vst [vmem:[#allocation7 + $0x8] sm:$0xff] %v56_v14 }
  0x2f   :  { %129 = shalt.err (!%p126_p1)
}
  0x30   :  { %s130_s11 = scalar_lea.hbm %s210_s2, 256 }
  0x31   :  { %p131_p2 = scmp.ne.s32.totalorder %s210_s2, %s130_s11  ;;  %p134_p3 = scmp.lt.u32.totalorder %s130_s11, %s210_s2 }
  0x33   :  { %p136_p4 = pnand %p134_p3, %p131_p2 }
  0x35   :  { %139 = shalt.err (!%p136_p4)
}
  0x36   :  { %70 = dma.vmem_to_hbm [thread:$0]  %s65_s7, 256, %s210_s2, [#allocation4], %s148_s0, %s148_s0, %s149_s29  }
  0x37   :  { %144 = dma.done.wait [#allocation4], 256  }
  0x38   :  { %145 = vsyncadd [#allocation4], 4294967040 }
  0x39   :  { %74 = vsyncpa [#allocation3], 1 }
  0x3a   :  { %75 = vsyncpa [#allocation4], 1 }
  0x3b   :  { %76 = vsyncpa [#allocation5], 1 }

</bundles_post_ra>
